<compile_context>
chip_gen: v6e
topology: v6e:2x2x1
jax: 0.10.0
libtpu: 0.0.40
codegen_flags: <defaults>
</compile_context>

<pallas_src>
import jax
import jax.numpy as jnp
from jax.experimental import pallas as pl
from jax.experimental.pallas import tpu as pltpu

_LANES = 128          # vreg lane width (last-dim tile unit)
_MAX_TILE_ROWS = 512  # sublane rows per grid step (>= 512 per perf feedback)


# --------------------------------------------------------------------------
# Kernels
# --------------------------------------------------------------------------
def _identity_kernel(x_ref, o_ref):
    # Forward: pure pass-through copy of a lane-dense tile.
    o_ref[...] = x_ref[...]


def _scale_kernel(alpha_ref, g_ref, o_ref):
    # Backward: grad_output * alpha.  alpha is a single scalar in SMEM.
    g = g_ref[...].astype(jnp.float32)
    o_ref[...] = (g * alpha_ref[0]).astype(o_ref.dtype)


# --------------------------------------------------------------------------
# Layout helpers + pallas_call wrappers
# --------------------------------------------------------------------------
def _as_lane_dense(x):
    """Flatten x to a lane-dense (rows, 128) slab. Returns (slab, n, tile_rows)."""
    flat = x.reshape(-1)
    n = flat.shape[0]
    rows = -(-n // _LANES)                      # ceil(n / 128)
    rows = ((rows + 7) // 8) * 8                # sublane multiple of 8
    tile_rows = min(_MAX_TILE_ROWS, rows)       # tile_rows is a multiple of 8
    rows = ((rows + tile_rows - 1) // tile_rows) * tile_rows
    pad = rows * _LANES - n
    if pad:
        flat = jnp.pad(flat, (0, pad))
    return flat.reshape(rows, _LANES), n, tile_rows


def _run_elementwise(kernel, slab, tile_rows, smem_scalar=None):
    rows = slab.shape[0]
    grid = (rows // tile_rows,)
    tile_spec = pl.BlockSpec((tile_rows, _LANES), lambda i: (i, 0))
    in_specs = [tile_spec]
    args = [slab]
    if smem_scalar is not None:
        in_specs = [pl.BlockSpec(memory_space=pltpu.MemorySpace.SMEM)] + in_specs
        args = [smem_scalar] + args
    return pl.pallas_call(
        kernel,
        out_shape=jax.ShapeDtypeStruct(slab.shape, slab.dtype),
        grid_spec=pl.GridSpec(grid=grid, in_specs=in_specs, out_specs=tile_spec),
        compiler_params=pltpu.CompilerParams(dimension_semantics=("parallel",)),
    )(*args)


def _identity_pallas(x):
    slab, n, tile_rows = _as_lane_dense(x)
    out = _run_elementwise(_identity_kernel, slab, tile_rows)
    return out.reshape(-1)[:n].reshape(x.shape)


def _scale_pallas(g, alpha):
    slab, n, tile_rows = _as_lane_dense(g)
    alpha_arr = jnp.asarray(alpha, dtype=jnp.float32).reshape(1)
    out = _run_elementwise(_scale_kernel, slab, tile_rows, smem_scalar=alpha_arr)
    return out.reshape(-1)[:n].reshape(g.shape)


# --------------------------------------------------------------------------
# custom_vjp tying forward identity + backward gradient scaling together
# --------------------------------------------------------------------------
@jax.custom_vjp
def gradient_scaler(x, alpha):
    """GradientScaler: identity in forward, gradient scaled by alpha in backward."""
    return _identity_pallas(x)


def _gs_fwd(x, alpha):
    alpha = jnp.asarray(alpha, dtype=jnp.float32)
    return _identity_pallas(x), alpha


def _gs_bwd(alpha, g):
    return _scale_pallas(g, alpha), jnp.zeros_like(alpha)


gradient_scaler.defvjp(_gs_fwd, _gs_bwd)


def gradient_scaler_forward(x, alpha=1.0, debug=False):
    """Module-level forward (matches GradientScaler.forward)."""
    alpha = jnp.asarray(alpha, dtype=jnp.float32)
    if debug:
        # TODO(synk): in-kernel printf needs interpret mode / log recorder; the
        # debug abs-mean print is done host-side with jax.debug.print instead.
        jax.debug.print("input: {}", jnp.mean(jnp.abs(x)))
    return gradient_scaler(x, alpha)


# --------------------------------------------------------------------------
# Demo / self-test
# --------------------------------------------------------------------------
if __name__ == "__main__":
    key = jax.random.PRNGKey(0)
    B, C, H, W = 2, 4, 16, 16
    x = jax.random.normal(key, (B, C, H, W), dtype=jnp.float32)
    alpha = jnp.float32(0.5)

    # Forward pass (identity) through the Pallas copy kernel.
    out = gradient_scaler_forward(x, alpha)
    out = jax.block_until_ready(out)
    assert out.shape == x.shape
    assert jnp.array_equal(out, x), "forward must be the identity"

    # Backward-pass semantics: d/dx sum(f(x)) == alpha everywhere (scale kernel).
    gx = jax.grad(lambda v: jnp.sum(gradient_scaler(v, alpha)))(x)
    gx = jax.block_until_ready(gx)
    assert jnp.allclose(gx, jnp.full_like(x, alpha), atol=1e-6), "grad must equal alpha"

    print("KERNEL_OK")
</pallas_src>

<mosaic_0001>
module attributes {stable_mosaic.version = 11 : i64} {
  func.func @_identity_kernel(%arg0: i32, %arg1: memref<16x128xf32, #tpu.memory_space<vmem>>, %arg2: memref<16x128xf32, #tpu.memory_space<vmem>>) attributes {dimension_semantics = [#tpu.dimension_semantics<parallel>], iteration_bounds = array<i64: 1>, scalar_prefetch = 0 : i64, scratch_operands = 0 : i64, tpu.core_type = #tpu.core_type<tc>, window_params = [{transform_indices = @transform_0, window_bounds = array<i64: 16, 128>}, {transform_indices = @transform_1, window_bounds = array<i64: 16, 128>}]} {
    %c0 = arith.constant 0 : index
    %c0_0 = arith.constant 0 : index
    %0 = vector.load %arg1[%c0, %c0_0] : memref<16x128xf32, #tpu.memory_space<vmem>>, vector<16x128xf32>
    %c0_1 = arith.constant 0 : index
    %c0_2 = arith.constant 0 : index
    %1 = vector.load %arg2[%c0_1, %c0_2] : memref<16x128xf32, #tpu.memory_space<vmem>>, vector<16x128xf32>
    tpu.vector_store %arg2[%c0_1, %c0_2], %0 {strides = array<i32>} : memref<16x128xf32, #tpu.memory_space<vmem>>, vector<16x128xf32>,
    return
  }
  func.func @transform_0(%arg0: i32) -> (i32, i32) {
    %c0_i32 = arith.constant 0 : i32
    %c0_i32_0 = arith.constant 0 : i32
    return %arg0, %c0_i32 : i32, i32
  }
  func.func @transform_1(%arg0: i32) -> (i32, i32) {
    %c0_i32 = arith.constant 0 : i32
    %c0_i32_0 = arith.constant 0 : i32
    return %arg0, %c0_i32 : i32, i32
  }
}

</mosaic_0001>

<bundles_post_ra>
// kernel: tpu_custom_call.1
= control target key start
LH: loop header
LB: loop body
LE: loop exit
PB: predicated region body
PF: predicated region fallthrough
CT: control target
= control target key end

     0   :  { %6 = vsyncpa [#allocation3], 0  ;;  %s112_s0 = inlined_call_operand.hbm [shape: f32[16,128], index: 0, kind: input, shape index: {}]   ;;  %s113_s1 = inlined_call_operand.hbm [shape: f32[16,128], index: 1, kind: output, shape index: {}]  }
   0x1   :  { %7 = vsyncpa [#allocation4], 0  ;;  %s92_s6 = smov [#allocation2]  }
   0x2   :  { %s13_s7 = sshll.u32 %s92_s6, 4  ;;  %s14_s7 = int_to_ptr.vmem [resolvable:$true] %s13_s7 }
   0x3   :  { %s56_s8 = scalar_lea.vmem %s14_s7, 256  ;;  %p61_p1 = scmp.lt.s32.totalorder %s14_s7, %s14_s7 }
   0x4   :  { %p57_p0 = scmp.ne.s32.totalorder %s14_s7, %s56_s8  ;;  %p62_p2 = scmp.lt.s32.totalorder %s56_s8, %s56_s8 }
   0x6   :  { %p63_p3 = por %p62_p2, %p61_p1 }
   0x8   :  { %p64_p4 = pnand %p63_p3, %p57_p0 }
   0xa   :  { %67 = shalt.err (!%p64_p4)
}
   0xb   :  { %s93_s9 = smov 128   ;;  %s94_s10 = smov 8  }
   0xc   :  { %19 = dma.hbm_to_vmem [thread:$0]  %s112_s0, 256, %s14_s7, [#allocation3], %s93_s9, %s93_s9, %s94_s10  }
   0xd   :  { %88 = dma.done.wait [#allocation3], 256  }
   0xe   :  { %89 = vsyncadd [#allocation3], 4294967040  ;;  %s95_s13 = smov [#allocation5]   ;;  %v23_v0 = vld [vmem:[#allocation2] sm:$0xff]  ;;  %v24_v1 = vld [vmem:[#allocation2 + $0x8] sm:$0xff] }
   0xf   :  { %s32_s14 = sshll.u32 %s95_s13, 4  ;;  %25 = vst [vmem:[#allocation5] sm:$0xff] %v23_v0  ;;  %26 = vst [vmem:[#allocation5 + $0x8] sm:$0xff] %v24_v1  ;;  %s33_s14 = int_to_ptr.vmem [resolvable:$true] %s32_s14 }
  0x10   :  { %s68_s15 = scalar_lea.vmem %s33_s14, 256  ;;  %p73_p6 = scmp.lt.s32.totalorder %s33_s14, %s33_s14 }
  0x11   :  { %p69_p5 = scmp.ne.s32.totalorder %s33_s14, %s68_s15  ;;  %p74_p7 = scmp.lt.s32.totalorder %s68_s15, %s68_s15 }
  0x13   :  { %p75_p8 = por %p74_p7, %p73_p6 }
  0x15   :  { %p76_p9 = pnand %p75_p8, %p69_p5 }
  0x17   :  { %79 = shalt.err (!%p76_p9)
}
  0x18   :  { %38 = dma.vmem_to_hbm [thread:$0]  %s33_s14, 256, %s113_s1, [#allocation4], %s93_s9, %s93_s9, %s94_s10  }
  0x19   :  { %90 = dma.done.wait [#allocation4], 256  }
  0x1a   :  { %91 = vsyncadd [#allocation4], 4294967040 }
  0x1b   :  { %42 = vsyncpa [#allocation3], 1 }
  0x1c   :  { %43 = vsyncpa [#allocation4], 1 }

</bundles_post_ra>
